<compile_context>
chip_gen: v7x
topology: tpu7x:2x2x1
jax: 0.10.0
libtpu: 0.0.40
codegen_flags: <defaults>
</compile_context>

<pallas_src>
import functools
import math

import jax
import jax.numpy as jnp
from jax.experimental import pallas as pl
from jax.experimental.pallas import tpu as pltpu

LANE = 128
SUBLANE = 8


def _round_up(x: int, m: int) -> int:
    return ((x + m - 1) // m) * m


def _vmem_capacity_bytes() -> int:
    """Per-TensorCore VMEM capacity; conservative v7x floor if query fails."""
    try:
        info = pltpu.get_tpu_info()
        cap = getattr(info, "vmem_capacity_bytes", None)
        if cap:
            return int(cap)
    except Exception:
        pass
    return 64 << 20


def _pinned_mode():
    """Single-buffer pipeline mode for constant-index (VMEM-resident) weights."""
    try:
        return pl.Buffered(buffer_count=1)
    except Exception:
        return None


def _const_spec(shape, pinned):
    if pinned is not None:
        try:
            return pl.BlockSpec(shape, lambda i: (0, 0), pipeline_mode=pinned)
        except TypeError:
            pass
    return pl.BlockSpec(shape, lambda i: (0, 0))


def _deep_lowrank_mvn_kernel(
    x_ref,    # (TM, d_in_p)          f32 activation tile (pipelined)
    wb_ref,   # (d_in_p, hidden_p)    bf16 backbone weight (VMEM-resident)
    bb_ref,   # (1, hidden_p)         f32 backbone bias
    wh_ref,   # (hidden_p, head_w_p)  bf16 fused head weight [mean|factors|pad|logdiag|pad]
    bh_ref,   # (1, head_w_p)         f32 fused head bias
    out_ref,  # (TM, head_w_p)        f32 fused output tile
    *,
    mf_w_p: int,
):
    # backbone: Linear + ReLU.  bf16 MXU operands, f32 accumulate.
    x_bf = x_ref[...].astype(jnp.bfloat16)
    h = jnp.dot(x_bf, wb_ref[...], preferred_element_type=jnp.float32)
    h = jnp.maximum(h + bb_ref[...], 0.0)

    # fused heads: one wide, lane-dense matmul (padded columns are exactly 0).
    y = jnp.dot(h.astype(jnp.bfloat16), wh_ref[...],
                preferred_element_type=jnp.float32) + bh_ref[...]

    # [mean | factors | pad] : plain unmasked, lane-aligned store.
    out_ref[:, :mf_w_p] = y[:, :mf_w_p]
    # [logdiag | pad] : stable softplus only on this lane-aligned slab (EUP).
    out_ref[:, mf_w_p:] = jnp.logaddexp(y[:, mf_w_p:], 0.0)


def prepare_params(params, latent_dim: int, rank: int):
    """One-time (init-time) padding + head fusion into the kernel weight layout."""
    wb, bb, wm, bm, wd, bd, wf, bf = params
    d_in, hidden = wb.shape
    d_in_p = _round_up(d_in, LANE)
    hidden_p = _round_up(hidden, LANE)
    mf_w = latent_dim + latent_dim * rank          # mean + factors
    mf_w_p = _round_up(mf_w, LANE)
    diag_w_p = _round_up(latent_dim, LANE)
    head_w_p = mf_w_p + diag_w_p

    # backbone weight/bias (padded hidden columns -> relu(0 + 0) == 0, exact)
    wb_p = jnp.zeros((d_in_p, hidden_p), jnp.float32).at[:d_in, :hidden].set(wb)
    bb_p = jnp.zeros((1, hidden_p), jnp.float32).at[:, :hidden].set(bb)

    # fused head columns = [mean | factors | zero-pad | logdiag | zero-pad]
    wh_p = jnp.zeros((hidden_p, head_w_p), jnp.float32)
    wh_p = wh_p.at[:hidden, :latent_dim].set(wm)
    wh_p = wh_p.at[:hidden, latent_dim:mf_w].set(wf)
    wh_p = wh_p.at[:hidden, mf_w_p:mf_w_p + latent_dim].set(wd)
    bh_p = jnp.zeros((1, head_w_p), jnp.float32)
    bh_p = bh_p.at[:, :latent_dim].set(bm)
    bh_p = bh_p.at[:, latent_dim:mf_w].set(bf)
    bh_p = bh_p.at[:, mf_w_p:mf_w_p + latent_dim].set(bd)

    # bf16 weights: MXU-native, half the VMEM / HBM stream.  Biases stay f32
    # (added after the f32 accumulate).
    return {
        "wb": wb_p.astype(jnp.bfloat16),
        "bb": bb_p,
        "wh": wh_p.astype(jnp.bfloat16),
        "bh": bh_p,
    }


@functools.partial(jax.jit, static_argnames=("latent_dim", "rank"))
def deep_lowrank_mvn_forward(x, prepared, *, latent_dim: int, rank: int):
    """x: (B, C, H, W) float32. Returns (mean, diag, factors)."""
    wb_p, bb_p = prepared["wb"], prepared["bb"]
    wh_p, bh_p = prepared["wh"], prepared["bh"]

    B = x.shape[0]
    x_flat = x.reshape(B, -1).astype(jnp.float32)   # row-major flatten == torch .view
    d_in = x_flat.shape[1]
    d_in_p, hidden_p = wb_p.shape
    head_w_p = wh_p.shape[1]
    mf_w_p = _round_up(latent_dim + latent_dim * rank, LANE)
    diag_w_p = head_w_p - mf_w_p

    # batch tile: minimize padding instead of a fixed 256-row tile
    TM_MAX = 512
    steps = max(1, math.ceil(B / TM_MAX))
    TM = _round_up(math.ceil(B / steps), SUBLANE)
    B_p = _round_up(B, TM)
    grid = (B_p // TM,)

    # pad only the dims that actually need it (no extra HBM activation copy
    # when shapes are already aligned)
    if (B_p != B) or (d_in_p != d_in):
        x_p = jnp.zeros((B_p, d_in_p), jnp.float32).at[:B, :d_in].set(x_flat)
    else:
        x_p = x_flat

    # VMEM budget: single-buffered bf16 weights + double-buffered x / out tiles
    weight_bytes = wb_p.size * 2 + wh_p.size * 2 + (bb_p.size + bh_p.size) * 4
    tile_bytes = 2 * (TM * d_in_p * 4 + TM * head_w_p * 4)
    est = weight_bytes + tile_bytes + (4 << 20)
    vmem_cap = _vmem_capacity_bytes()
    headroom = max(8 << 20, vmem_cap // 8)          # compiler-internal scratch
    # TODO(synk): if est exceeds (vmem_cap - headroom) for real shapes, switch
    #   to the K-tiled path described at the top of the file instead of clamping.
    vmem_limit = int(min(max(est, 32 << 20), vmem_cap - headroom))

    flops = 2 * B_p * (d_in_p * hidden_p + hidden_p * head_w_p)
    bytes_accessed = B_p * d_in_p * 4 + weight_bytes + B_p * head_w_p * 4
    cost = pl.CostEstimate(flops=flops,
                           transcendentals=B_p * diag_w_p,
                           bytes_accessed=bytes_accessed)

    pinned = _pinned_mode()
    kernel = functools.partial(_deep_lowrank_mvn_kernel, mf_w_p=mf_w_p)

    fused = pl.pallas_call(
        kernel,
        out_shape=jax.ShapeDtypeStruct((B_p, head_w_p), jnp.float32),
        grid=grid,
        in_specs=[
            pl.BlockSpec((TM, d_in_p), lambda i: (i, 0)),        # activations: pipelined
            _const_spec((d_in_p, hidden_p), pinned),             # weights: pinned, 1-buffered
            _const_spec((1, hidden_p), pinned),
            _const_spec((hidden_p, head_w_p), pinned),
            _const_spec((1, head_w_p), pinned),
        ],
        out_specs=pl.BlockSpec((TM, head_w_p), lambda i: (i, 0)),
        compiler_params=pltpu.CompilerParams(
            dimension_semantics=("parallel",),   # harmless at grid=1; splits big B on v7x
            vmem_limit_bytes=vmem_limit,
        ),
        cost_estimate=cost,
    )(x_p, wb_p, bb_p, wh_p, bh_p)

    mean = fused[:B, :latent_dim]
    factors = fused[:B, latent_dim:latent_dim + latent_dim * rank]
    factors = factors.reshape(B, latent_dim, rank)
    diag = fused[:B, mf_w_p:mf_w_p + latent_dim]
    return mean, diag, factors


def init_params(key, d_in, hidden_dim, latent_dim, rank):
    """Deterministic synthetic parameter init (Linear weights stored as (in, out))."""
    ks = jax.random.split(key, 8)
    scale_b = 1.0 / jnp.sqrt(d_in)
    scale_h = 1.0 / jnp.sqrt(hidden_dim)
    wb = jax.random.normal(ks[0], (d_in, hidden_dim), jnp.float32) * scale_b
    bb = jax.random.normal(ks[1], (1, hidden_dim), jnp.float32) * 0.01
    wm = jax.random.normal(ks[2], (hidden_dim, latent_dim), jnp.float32) * scale_h
    bm = jax.random.normal(ks[3], (1, latent_dim), jnp.float32) * 0.01
    wd = jax.random.normal(ks[4], (hidden_dim, latent_dim), jnp.float32) * scale_h
    bd = jax.random.normal(ks[5], (1, latent_dim), jnp.float32) * 0.01
    wf = jax.random.normal(ks[6], (hidden_dim, latent_dim * rank), jnp.float32) * scale_h
    bf = jax.random.normal(ks[7], (1, latent_dim * rank), jnp.float32) * 0.01
    return (wb, bb, wm, bm, wd, bd, wf, bf)


def reference_forward(x, params, latent_dim, rank):
    """Pure-JAX f32 reference mirroring the PyTorch forward."""
    wb, bb, wm, bm, wd, bd, wf, bf = params
    B = x.shape[0]
    h = jnp.maximum(x.reshape(B, -1) @ wb + bb, 0.0)
    mean = h @ wm + bm
    diag = jax.nn.softplus(h @ wd + bd)
    factors = (h @ wf + bf).reshape(B, latent_dim, rank)
    return mean, diag, factors


if __name__ == "__main__":
    # Small shapes consistent with the module's forward:
    B, C, H, W = 2, 4, 16, 16
    hidden_dim, latent_dim, rank = 32, 16, 4
    d_in = C * H * W

    key = jax.random.PRNGKey(0)
    k_x, k_p = jax.random.split(key)
    x = jax.random.normal(k_x, (B, C, H, W), jnp.float32)
    params = init_params(k_p, d_in, hidden_dim, latent_dim, rank)
    prepared = prepare_params(params, latent_dim, rank)     # one-time weight prep

    mean, diag, factors = deep_lowrank_mvn_forward(
        x, prepared, latent_dim=latent_dim, rank=rank)
    jax.block_until_ready((mean, diag, factors))

    # correctness check against the pure-JAX f32 reference (bf16 MXU operands
    # with f32 accumulate -> use a bf16-appropriate tolerance)
    mean_r, diag_r, factors_r = reference_forward(x, params, latent_dim, rank)
    assert mean.shape == (B, latent_dim)
    assert diag.shape == (B, latent_dim)
    assert factors.shape == (B, latent_dim, rank)
    assert jnp.allclose(mean, mean_r, atol=3e-2, rtol=3e-2)
    assert jnp.allclose(diag, diag_r, atol=3e-2, rtol=3e-2)
    assert jnp.allclose(factors, factors_r, atol=3e-2, rtol=3e-2)
    assert bool(jnp.all(diag > 0))  # softplus output must be positive

    print("KERNEL_OK")
</pallas_src>

<mosaic_0001>
module attributes {stable_mosaic.version = 11 : i64} {
  func.func @_deep_lowrank_mvn_kernel(%arg0: i32, %arg1: memref<8x1024xf32, #tpu.memory_space<vmem>>, %arg2: memref<1024x128xbf16, #tpu.memory_space<vmem>>, %arg3: memref<1x128xf32, #tpu.memory_space<vmem>>, %arg4: memref<128x256xbf16, #tpu.memory_space<vmem>>, %arg5: memref<1x256xf32, #tpu.memory_space<vmem>>, %arg6: memref<8x256xf32, #tpu.memory_space<vmem>>) attributes {dimension_semantics = [#tpu.dimension_semantics<parallel>], iteration_bounds = array<i64: 1>, scalar_prefetch = 0 : i64, scratch_operands = 0 : i64, tpu.core_type = #tpu.core_type<tc>, window_params = [{transform_indices = @transform_0, window_bounds = array<i64: 8, 1024>}, {pipeline_mode = #tpu.pipeline_mode<synchronous>, transform_indices = @transform_1, window_bounds = array<i64: 1024, 128>}, {pipeline_mode = #tpu.pipeline_mode<synchronous>, transform_indices = @transform_2, window_bounds = array<i64: 1, 128>}, {pipeline_mode = #tpu.pipeline_mode<synchronous>, transform_indices = @transform_3, window_bounds = array<i64: 128, 256>}, {pipeline_mode = #tpu.pipeline_mode<synchronous>, transform_indices = @transform_4, window_bounds = array<i64: 1, 256>}, {transform_indices = @transform_5, window_bounds = array<i64: 8, 256>}]} {
    %c0 = arith.constant 0 : index
    %c0_0 = arith.constant 0 : index
    %0 = vector.load %arg1[%c0, %c0_0] : memref<8x1024xf32, #tpu.memory_space<vmem>>, vector<8x1024xf32>
    %1 = arith.truncf %0 : vector<8x1024xf32> to vector<8x1024xbf16>
    %c0_1 = arith.constant 0 : index
    %c0_2 = arith.constant 0 : index
    %2 = vector.load %arg2[%c0_1, %c0_2] : memref<1024x128xbf16, #tpu.memory_space<vmem>>, vector<1024x128xbf16>
    %cst = arith.constant dense<0.000000e+00> : vector<8x128xf32>
    %3 = tpu.matmul %1, %2, %cst {dimension_numbers = #tpu.dot_dimension_numbers<[1], [0], [0], [1], [0, 0, 1, 1], [], []>} : vector<8x1024xbf16>, vector<1024x128xbf16>, vector<8x128xf32> -> vector<8x128xf32>
    %c0_3 = arith.constant 0 : index
    %c0_4 = arith.constant 0 : index
    %4 = vector.load %arg3[%c0_3, %c0_4] : memref<1x128xf32, #tpu.memory_space<vmem>>, vector<1x128xf32>
    %5 = vector.broadcast %4 : vector<1x128xf32> to vector<8x128xf32>
    %6 = arith.addf %3, %5 : vector<8x128xf32>
    %cst_5 = arith.constant 0.000000e+00 : f32
    %7 = vector.broadcast %cst_5 : f32 to vector<8x128xf32>
    %8 = arith.maximumf %6, %7 : vector<8x128xf32>
    %9 = arith.truncf %8 : vector<8x128xf32> to vector<8x128xbf16>
    %c0_6 = arith.constant 0 : index
    %c0_7 = arith.constant 0 : index
    %10 = vector.load %arg4[%c0_6, %c0_7] : memref<128x256xbf16, #tpu.memory_space<vmem>>, vector<128x256xbf16>
    %cst_8 = arith.constant dense<0.000000e+00> : vector<8x256xf32>
    %11 = tpu.matmul %9, %10, %cst_8 {dimension_numbers = #tpu.dot_dimension_numbers<[1], [0], [0], [1], [0, 0, 1, 1], [], []>} : vector<8x128xbf16>, vector<128x256xbf16>, vector<8x256xf32> -> vector<8x256xf32>
    %c0_9 = arith.constant 0 : index
    %c0_10 = arith.constant 0 : index
    %12 = vector.load %arg5[%c0_9, %c0_10] : memref<1x256xf32, #tpu.memory_space<vmem>>, vector<1x256xf32>
    %13 = vector.broadcast %12 : vector<1x256xf32> to vector<8x256xf32>
    %14 = arith.addf %11, %13 : vector<8x256xf32>
    %15 = vector.extract_strided_slice %14 {offsets = [0, 0], sizes = [8, 128], strides = [1, 1]} : vector<8x256xf32> to vector<8x128xf32>
    %c0_11 = arith.constant 0 : index
    %c0_12 = arith.constant 0 : index
    %16 = vector.load %arg6[%c0_11, %c0_12] : memref<8x256xf32, #tpu.memory_space<vmem>>, vector<8x128xf32>
    tpu.vector_store %arg6[%c0_11, %c0_12], %15 {strides = array<i32>} : memref<8x256xf32, #tpu.memory_space<vmem>>, vector<8x128xf32>,
    %17 = vector.extract_strided_slice %14 {offsets = [0, 128], sizes = [8, 128], strides = [1, 1]} : vector<8x256xf32> to vector<8x128xf32>
    %cst_13 = arith.constant 0.000000e+00 : f32
    %18 = vector.broadcast %cst_13 : f32 to vector<8x128xf32>
    %19 = arith.maximumf %17, %18 : vector<8x128xf32>
    %20 = vector.broadcast %cst_13 : f32 to vector<8x128xf32>
    %21 = arith.subf %17, %20 : vector<8x128xf32>
    %22 = arith.cmpf one, %21, %21 : vector<8x128xf32>
    %23 = vector.broadcast %cst_13 : f32 to vector<8x128xf32>
    %24 = arith.addf %17, %23 : vector<8x128xf32>
    %25 = math.absf %21 : vector<8x128xf32>
    %cst_14 = arith.constant 0.000000e+00 : f32
    %26 = vector.broadcast %cst_14 : f32 to vector<8x128xf32>
    %27 = arith.subf %26, %25 : vector<8x128xf32>
    %28 = math.exp %27 : vector<8x128xf32>
    %29 = math.log1p %28 : vector<8x128xf32>
    %30 = arith.addf %19, %29 : vector<8x128xf32>
    %31 = arith.select %22, %24, %30 : vector<8x128xi1>, vector<8x128xf32>
    %c0_15 = arith.constant 0 : index
    %c128 = arith.constant 128 : index
    %32 = vector.load %arg6[%c0_15, %c128] : memref<8x256xf32, #tpu.memory_space<vmem>>, vector<8x128xf32>
    tpu.vector_store %arg6[%c0_15, %c128], %31 {strides = array<i32>} : memref<8x256xf32, #tpu.memory_space<vmem>>, vector<8x128xf32>,
    return
  }
  func.func @transform_0(%arg0: i32) -> (i32, i32) {
    %c0_i32 = arith.constant 0 : i32
    %c0_i32_0 = arith.constant 0 : i32
    return %arg0, %c0_i32 : i32, i32
  }
  func.func @transform_1(%arg0: i32) -> (i32, i32) {
    %c0_i32 = arith.constant 0 : i32
    %c0_i32_0 = arith.constant 0 : i32
    %c0_i32_1 = arith.constant 0 : i32
    return %c0_i32, %c0_i32_0 : i32, i32
  }
  func.func @transform_2(%arg0: i32) -> (i32, i32) {
    %c0_i32 = arith.constant 0 : i32
    %c0_i32_0 = arith.constant 0 : i32
    %c0_i32_1 = arith.constant 0 : i32
    return %c0_i32, %c0_i32_0 : i32, i32
  }
  func.func @transform_3(%arg0: i32) -> (i32, i32) {
    %c0_i32 = arith.constant 0 : i32
    %c0_i32_0 = arith.constant 0 : i32
    %c0_i32_1 = arith.constant 0 : i32
    return %c0_i32, %c0_i32_0 : i32, i32
  }
  func.func @transform_4(%arg0: i32) -> (i32, i32) {
    %c0_i32 = arith.constant 0 : i32
    %c0_i32_0 = arith.constant 0 : i32
    %c0_i32_1 = arith.constant 0 : i32
    return %c0_i32, %c0_i32_0 : i32, i32
  }
  func.func @transform_5(%arg0: i32) -> (i32, i32) {
    %c0_i32 = arith.constant 0 : i32
    %c0_i32_0 = arith.constant 0 : i32
    return %arg0, %c0_i32 : i32, i32
  }
}

</mosaic_0001>

<bundles_post_ra>
// kernel: deep_lowrank_mvn_forward.1
= control target key start
LH: loop header
LB: loop body
LE: loop exit
PB: predicated region body
PF: predicated region fallthrough
CT: control target
= control target key end

     0   :  { %10 = vsyncpa [#allocation3], 0  ;;  %s1195_s18 = smov [#allocation2]   ;;  %s1325_s0 = inlined_call_operand.vmem [shape: f32[8,1024], index: 0, kind: input, shape index: {}]   ;;  %s1326_s1 = inlined_call_operand.hbm [shape: bf16[1024,128], index: 1, kind: input, shape index: {}]   ;;  %s1327_s2 = inlined_call_operand.vmem [shape: f32[1,128], index: 2, kind: input, shape index: {}]   ;;  %s1328_s3 = inlined_call_operand.vmem [shape: bf16[128,256], index: 3, kind: input, shape index: {}]   ;;  %s1329_s4 = inlined_call_operand.vmem [shape: f32[1,256], index: 4, kind: input, shape index: {}]   ;;  %s1330_s5 = inlined_call_operand.vmem [shape: f32[8,256], index: 5, kind: output, shape index: {}]  }
   0x1   :  { %s18_s19 = sshll.u32 %s1195_s18, 4  ;;  %s1171_s22 = scalar_lea.hbm %s1326_s1, 8192  ;;  %s19_s19 = int_to_ptr.vmem [resolvable:$true] %s18_s19 }
   0x2   :  { %p1172_p0 = scmp.ne.s32.totalorder %s1326_s1, %s1171_s22  ;;  %p1175_p1 = scmp.lt.u32.totalorder %s1171_s22, %s1326_s1 }
   0x4   :  { %p1177_p2 = pnand %p1175_p1, %p1172_p0 }
   0x6   :  { %1180 = shalt.err (!%p1177_p2)
}
   0x7   :  { %s1181_s27 = scalar_lea.vmem %s19_s19, 8192  ;;  %p1186_p4 = scmp.lt.s32.totalorder %s19_s19, %s19_s19 }
   0x8   :  { %p1182_p3 = scmp.ne.s32.totalorder %s19_s19, %s1181_s27  ;;  %p1187_p5 = scmp.lt.s32.totalorder %s1181_s27, %s1181_s27 }
   0xa   :  { %p1188_p6 = por %p1187_p5, %p1186_p4 }
   0xc   :  { %p1189_p7 = pnand %p1188_p6, %p1182_p3 }
   0xe   :  { %1192 = shalt.err (!%p1189_p7)
}
   0xf   :  { %s1196_s28 = smov 64   ;;  %s1197_s29 = smov 4  }
  0x10   :  { %24 = dma.hbm_to_vmem [thread:$0]  %s1326_s1, 8192, %s19_s19, [#allocation3], %s1196_s28, %s1196_s28, %s1197_s29  }
  0x11   :  { %1193 = dma.done.wait [#allocation3], 8192  }
  0x12   :  { %1194 = vsyncadd [#allocation3], 4294959104  ;;  %v1079_v0 = vld [vmem:[#allocation2 + $0x40] sm:$0xff]   ;;  %v1083_v4 = vld [vmem:[#allocation2 + $0x48] sm:$0xff]  }
  0x13   :  { %v1080_v1 = vld [vmem:[#allocation2 + $0xc0] sm:$0xff]   ;;  %987 = vmatprep.subr.bf16.mxu0 %v1079_v0  ;;  %v1084_v5 = vld [vmem:[#allocation2 + $0xc8] sm:$0xff]   ;;  %v1087_v8 = vld [vmem:[#allocation2 + $0x50] sm:$0xff]  }
  0x14   :  { %v1081_v2 = vld [vmem:[#allocation2] sm:$0xff]   ;;  %1009 = vmatprep.subr.bf16.mxu1 %v1080_v1  ;;  %v1085_v6 = vld [vmem:[#allocation2 + $0x8] sm:$0xff]   ;;  %v1088_v9 = vld [vmem:[#allocation2 + $0xd0] sm:$0xff]  }
  0x15   :  { %v1082_v3 = vld [vmem:[#allocation2 + $0x80] sm:$0xff]   ;;  %988 = vmatpush3.bf16.msra.mxu0 %v1081_v2  ;;  %v1086_v7 = vld [vmem:[#allocation2 + $0x88] sm:$0xff]   ;;  %v1089_v10 = vld [vmem:[#allocation2 + $0x10] sm:$0xff]  }
  0x16   :  { %1010 = vmatpush3.bf16.msra.mxu1 %v1082_v3  ;;  %989 = vmatprep.subr.bf16.mxu0 %v1083_v4  ;;  %v1090_v11 = vld [vmem:[#allocation2 + $0x90] sm:$0xff]   ;;  %v1091_v12 = vld [vmem:[#allocation2 + $0x58] sm:$0xff]   ;;  %v1095_v16 = vld [vmem:[#allocation2 + $0x60] sm:$0xff]  }
  0x17   :  { %1011 = vmatprep.subr.bf16.mxu1 %v1084_v5  ;;  %v1092_v13 = vld [vmem:[#allocation2 + $0xd8] sm:$0xff]   ;;  %v1096_v17 = vld [vmem:[#allocation2 + $0xe0] sm:$0xff]   ;;  %v1099_v20 = vld [vmem:[#allocation2 + $0x68] sm:$0xff]  }
  0x18   :  { %v1093_v14 = vld [vmem:[#allocation2 + $0x18] sm:$0xff]   ;;  %v1097_v18 = vld [vmem:[#allocation2 + $0x20] sm:$0xff]   ;;  %v1100_v21 = vld [vmem:[#allocation2 + $0xe8] sm:$0xff]  }
  0x19   :  { %990 = vmatpush3.bf16.msra.mxu0 %v1085_v6  ;;  %v1094_v15 = vld [vmem:[#allocation2 + $0x98] sm:$0xff]   ;;  %v1098_v19 = vld [vmem:[#allocation2 + $0xa0] sm:$0xff]   ;;  %v1101_v22 = vld [vmem:[#allocation2 + $0x28] sm:$0xff]  }
  0x1a   :  { %1012 = vmatpush3.bf16.msra.mxu1 %v1086_v7  ;;  %991 = vmatprep.subr.bf16.mxu0 %v1087_v8  ;;  %v1102_v23 = vld [vmem:[#allocation2 + $0xa8] sm:$0xff]   ;;  %v1103_v24 = vld [vmem:[#allocation2 + $0x70] sm:$0xff]   ;;  %v1107_v28 = vld [vmem:[#allocation2 + $0x78] sm:$0xff]  }
  0x1b   :  { %1013 = vmatprep.subr.bf16.mxu1 %v1088_v9  ;;  %v1104_v25 = vld [vmem:[#allocation2 + $0xf0] sm:$0xff]   ;;  %v1108_v29 = vld [vmem:[#allocation2 + $0xf8] sm:$0xff]   ;;  %v36_v32 = vld [vmem:[%s1325_s0 + $0x8] sm:$0xff] }
  0x1c   :  { %v1105_v26 = vld [vmem:[#allocation2 + $0x30] sm:$0xff]   ;;  %v1109_v30 = vld [vmem:[#allocation2 + $0x38] sm:$0xff]   ;;  %v35_v34 = vld [vmem:[%s1325_s0] sm:$0xff]  ;;  %v44_v35 = vpack.c.bf16 %v36_v32, %v36_v32  ;;  %v1198_v32 = vmov 0  }
  0x1d   :  { %992 = vmatpush3.bf16.msra.mxu0 %v1089_v10  ;;  %v1106_v27 = vld [vmem:[#allocation2 + $0xb0] sm:$0xff]   ;;  %v1110_v31 = vld [vmem:[#allocation2 + $0xb8] sm:$0xff]   ;;  %v43_v37 = vpack.c.bf16 %v35_v34, %v35_v34  ;;  %v1111_v40 = vld [vmem:[#allocation2 + $0x140] sm:$0xff]  }
  0x1e   :  { %1014 = vmatpush3.bf16.msra.mxu1 %v1090_v11  ;;  %993 = vmatprep.subr.bf16.mxu0 %v1091_v12  ;;  %v38_v33 = vld [vmem:[%s1325_s0 + $0x18] sm:$0xff]  ;;  %v37_v38 = vld [vmem:[%s1325_s0 + $0x10] sm:$0xff]  ;;  %v1112_v41 = vld [vmem:[#allocation2 + $0x1c0] sm:$0xff]  }
  0x1f   :  { %1015 = vmatprep.subr.bf16.mxu1 %v1092_v13  ;;  %v46_v36 = vpack.c.bf16 %v38_v33, %v38_v33  ;;  %v45_v39 = vpack.c.bf16 %v37_v38, %v37_v38  ;;  %602 = vmatprep.mubr.bf16.mxu0 %v44_v35  ;;  %v1113_v42 = vld [vmem:[#allocation2 + $0x100] sm:$0xff]   ;;  %v1115_v44 = vld [vmem:[#allocation2 + $0x148] sm:$0xff]   ;;  %v1119_v48 = vld [vmem:[#allocation2 + $0x150] sm:$0xff]  }
  0x20   :  { %v1114_v43 = vld [vmem:[#allocation2 + $0x180] sm:$0xff]   ;;  %v1116_v45 = vld [vmem:[#allocation2 + $0x1c8] sm:$0xff]   ;;  %v1120_v49 = vld [vmem:[#allocation2 + $0x1d0] sm:$0xff]  }
  0x21   :  { %994 = vmatpush3.bf16.msra.mxu0 %v1093_v14  ;;  %642 = vmatprep.mubr.bf16.mxu1 %v46_v36  ;;  %v1117_v46 = vld [vmem:[#allocation2 + $0x108] sm:$0xff]   ;;  %v1121_v50 = vld [vmem:[#allocation2 + $0x110] sm:$0xff]   ;;  %v1123_v52 = vld [vmem:[#allocation2 + $0x158] sm:$0xff]  }
  0x22   :  { %1016 = vmatpush3.bf16.msra.mxu1 %v1094_v15  ;;  %995 = vmatprep.subr.bf16.mxu0 %v1095_v16  ;;  %v1118_v47 = vld [vmem:[#allocation2 + $0x188] sm:$0xff]   ;;  %v1122_v51 = vld [vmem:[#allocation2 + $0x190] sm:$0xff]   ;;  %v1124_v53 = vld [vmem:[#allocation2 + $0x1d8] sm:$0xff]  }
  0x23   :  { %1017 = vmatprep.subr.bf16.mxu1 %v1096_v17  ;;  %v1125_v54 = vld [vmem:[#allocation2 + $0x118] sm:$0xff]   ;;  %v1127_v56 = vld [vmem:[#allocation2 + $0x160] sm:$0xff]   ;;  %v1131_v60 = vld [vmem:[#allocation2 + $0x168] sm:$0xff]  }
  0x24   :  { %v1126_v55 = vld [vmem:[#allocation2 + $0x198] sm:$0xff]   ;;  %v1128_v57 = vld [vmem:[#allocation2 + $0x1e0] sm:$0xff]   ;;  %v1132_v61 = vld [vmem:[#allocation2 + $0x1e8] sm:$0xff]  }
  0x25   :  { %996 = vmatpush3.bf16.msra.mxu0 %v1097_v18  ;;  %v1129_v58 = vld [vmem:[#allocation2 + $0x120] sm:$0xff]   ;;  %v1133_v62 = vld [vmem:[#allocation2 + $0x128] sm:$0xff]   ;;  %v1135_v0 = vld [vmem:[#allocation2 + $0x170] sm:$0xff]  }
  0x26   :  { %1018 = vmatpush3.bf16.msra.mxu1 %v1098_v19  ;;  %997 = vmatprep.subr.bf16.mxu0 %v1099_v20  ;;  %v1130_v59 = vld [vmem:[#allocation2 + $0x1a0] sm:$0xff]   ;;  %v1134_v63 = vld [vmem:[#allocation2 + $0x1a8] sm:$0xff]   ;;  %v1136_v1 = vld [vmem:[#allocation2 + $0x1f0] sm:$0xff]  }
  0x27   :  { %1019 = vmatprep.subr.bf16.mxu1 %v1100_v21  ;;  %v1137_v2 = vld [vmem:[#allocation2 + $0x130] sm:$0xff]   ;;  %v1139_v4 = vld [vmem:[#allocation2 + $0x178] sm:$0xff]   ;;  %v40_v8 = vld [vmem:[%s1325_s0 + $0x28] sm:$0xff] }
  0x28   :  { %v1138_v3 = vld [vmem:[#allocation2 + $0x1b0] sm:$0xff]   ;;  %v1140_v5 = vld [vmem:[#allocation2 + $0x1f8] sm:$0xff]   ;;  %v48_v10 = vpack.c.bf16 %v40_v8, %v40_v8  ;;  %v39_v12 = vld [vmem:[%s1325_s0 + $0x20] sm:$0xff] }
  0x29   :  { %998 = vmatpush3.bf16.msra.mxu0 %v1101_v22  ;;  %v1141_v6 = vld [vmem:[#allocation2 + $0x138] sm:$0xff]   ;;  %v41_v13 = vld [vmem:[%s1325_s0 + $0x30] sm:$0xff]  ;;  %v47_v14 = vpack.c.bf16 %v39_v12, %v39_v12  ;;  %v1143_v16 = vld [vmem:[%s1328_s3] ss:$8 sps:$4 sm:$0xff]  }
  0x2a   :  { %1020 = vmatpush3.bf16.msra.mxu1 %v1102_v23  ;;  %999 = vmatprep.subr.bf16.mxu0 %v1103_v24  ;;  %v1142_v7 = vld [vmem:[#allocation2 + $0x1b8] sm:$0xff]   ;;  %v49_v15 = vpack.c.bf16 %v41_v13, %v41_v13  ;;  %v1145_v17 = vld [vmem:[%s1328_s3 + $0x4] ss:$8 sps:$4 sm:$0xff]   ;;  %v1149_v21 = vld [vmem:[%s1328_s3 + $0x20] ss:$8 sps:$4 sm:$0xff]  }
  0x2b   :  { %1021 = vmatprep.subr.bf16.mxu1 %v1104_v25  ;;  %v42_v9 = vld [vmem:[%s1325_s0 + $0x38] sm:$0xff]  ;;  %v1151_v20 = vld [vmem:[%s1328_s3 + $0x24] ss:$8 sps:$4 sm:$0xff]   ;;  %v1155_v25 = vld [vmem:[%s1328_s3 + $0x40] ss:$8 sps:$4 sm:$0xff]  }
  0x2c   :  { %v50_v11 = vpack.c.bf16 %v42_v9, %v42_v9  ;;  %v1148_v18 = vld [vmem:[%s1328_s3 + $0x14] ss:$8 sps:$4 sm:$0xff]   ;;  %v1146_v19 = vld [vmem:[%s1328_s3 + $0x10] ss:$8 sps:$4 sm:$0xff]   ;;  %v1157_v24 = vld [vmem:[%s1328_s3 + $0x44] ss:$8 sps:$4 sm:$0xff]  }
  0x2d   :  { %1000 = vmatpush3.bf16.msra.mxu0 %v1105_v26  ;;  %v1154_v22 = vld [vmem:[%s1328_s3 + $0x34] ss:$8 sps:$4 sm:$0xff]   ;;  %v1152_v23 = vld [vmem:[%s1328_s3 + $0x30] ss:$8 sps:$4 sm:$0xff]   ;;  %v906_v35 = vld [vmem:[%s1327_s2] ss:$0 sm:$0xff] }
  0x2e   :  { %1022 = vmatpush3.bf16.msra.mxu1 %v1106_v27  ;;  %1001 = vmatprep.subr.bf16.mxu0 %v1107_v28  ;;  %v1160_v26 = vld [vmem:[%s1328_s3 + $0x54] ss:$8 sps:$4 sm:$0xff]   ;;  %v1158_v27 = vld [vmem:[%s1328_s3 + $0x50] ss:$8 sps:$4 sm:$0xff]   ;;  %v1163_v28 = vld [vmem:[%s1328_s3 + $0x64] ss:$8 sps:$4 sm:$0xff]  }
  0x2f   :  { %1023 = vmatprep.subr.bf16.mxu1 %v1108_v29  ;;  %v1161_v29 = vld [vmem:[%s1328_s3 + $0x60] ss:$8 sps:$4 sm:$0xff]  }
  0x31   :  { %1002 = vmatpush3.bf16.msra.mxu0 %v1109_v30  ;;  %v1166_v30 = vld [vmem:[%s1328_s3 + $0x74] ss:$8 sps:$4 sm:$0xff]  }
  0x32   :  { %1024 = vmatpush3.bf16.msra.mxu1 %v1110_v31  ;;  %1031 = vmatprep.subr.bf16.mxu0 %v1111_v40  ;;  %v1164_v31 = vld [vmem:[%s1328_s3 + $0x70] ss:$8 sps:$4 sm:$0xff]  }
  0x33   :  { %1053 = vmatprep.subr.bf16.mxu1 %v1112_v41 }
  0x34   :  { %603 = vmatmul.mubr.bf16.vlgmr.msra.gmra.mrb[0].mxu0 %v43_v37 }
  0x35   :  { %643 = vmatmul.mubr.bf16.vlgmr.msra.gmra.mrb[0].mxu1 %v45_v39  ;;  %1032 = vmatpush3.bf16.msra.mxu0 %v1113_v42 }
  0x36   :  { %1054 = vmatpush3.bf16.msra.mxu1 %v1114_v43  ;;  %1033 = vmatprep.subr.bf16.mxu0 %v1115_v44 }
  0x37   :  { %1055 = vmatprep.subr.bf16.mxu1 %v1116_v45  ;;  %682 = vmatprep.mubr.bf16.mxu0 %v48_v10 }
  0x38   :  { %722 = vmatprep.mubr.bf16.mxu1 %v50_v11 }
  0x39   :  { %1034 = vmatpush3.bf16.msra.mxu0 %v1117_v46 }
  0x3a   :  { %1056 = vmatpush3.bf16.msra.mxu1 %v1118_v47  ;;  %1035 = vmatprep.subr.bf16.mxu0 %v1119_v48 }
  0x3b   :  { %1057 = vmatprep.subr.bf16.mxu1 %v1120_v49 }
  0x3d   :  { %1036 = vmatpush3.bf16.msra.mxu0 %v1121_v50 }
  0x3e   :  { %1058 = vmatpush3.bf16.msra.mxu1 %v1122_v51  ;;  %1037 = vmatprep.subr.bf16.mxu0 %v1123_v52 }
  0x3f   :  { %1059 = vmatprep.subr.bf16.mxu1 %v1124_v53 }
  0x41   :  { %1038 = vmatpush3.bf16.msra.mxu0 %v1125_v54 }
  0x42   :  { %1060 = vmatpush3.bf16.msra.mxu1 %v1126_v55  ;;  %1039 = vmatprep.subr.bf16.mxu0 %v1127_v56 }
  0x43   :  { %1061 = vmatprep.subr.bf16.mxu1 %v1128_v57 }
  0x45   :  { %1040 = vmatpush3.bf16.msra.mxu0 %v1129_v58 }
  0x46   :  { %1062 = vmatpush3.bf16.msra.mxu1 %v1130_v59  ;;  %1041 = vmatprep.subr.bf16.mxu0 %v1131_v60  ;;  %v750_v60 = vlaneseq }
  0x47   :  { %1063 = vmatprep.subr.bf16.mxu1 %v1132_v61 }
  0x48   :  { %v751_v61 = vshrl.u32 %v750_v60, 7 }
  0x49   :  { %1042 = vmatpush3.bf16.msra.mxu0 %v1133_v62 }
  0x4a   :  { %1064 = vmatpush3.bf16.msra.mxu1 %v1134_v63  ;;  %1043 = vmatprep.subr.bf16.mxu0 %v1135_v0  ;;  %v752_v62 = vsub.s32 0, %v751_v61  ;;  %v748_v63 = vld [vmem:[%s1329_s4] sm:$0x3]  ;;  %v756_v0 = vsub.s32 1, %v751_v61 }
  0x4b   :  { %1065 = vmatprep.subr.bf16.mxu1 %v1136_v1 }
  0x4c   :  { %v753_v1 = vrot.slane %v748_v63, %v752_v62 }
  0x4d   :  { %1044 = vmatpush3.bf16.msra.mxu0 %v1137_v2  ;;  %v757_v2 = vrot.slane %v748_v63, %v756_v0 }
  0x4e   :  { %1066 = vmatpush3.bf16.msra.mxu1 %v1138_v3  ;;  %1045 = vmatprep.subr.bf16.mxu0 %v1139_v4 }
  0x4f   :  { %1067 = vmatprep.subr.bf16.mxu1 %v1140_v5 }
  0x51   :  { %1046 = vmatpush3.bf16.msra.mxu0 %v1141_v6 }
  0x52   :  { %1068 = vmatpush3.bf16.msra.mxu1 %v1142_v7  ;;  %840 = vmatprep.subr.bf16.mxu0 %v1145_v17 }
  0x54   :  { %683 = vmatmul.mubr.bf16.vlgmr.msra.gmra.mrb[4].mxu0 %v47_v14 }
  0x55   :  { %723 = vmatmul.mubr.bf16.vlgmr.msra.gmra.mrb[4].mxu1 %v49_v15  ;;  %841 = vmatpush1.bf16.msra.mxu0 %v1143_v16 }
  0x56   :  { %842 = vmatprep.subr.bf16.mxu0 %v1148_v18  ;;  %872 = vmatprep.mubr.bf16.mxu0 %v1198_v32 }
  0x59   :  { %843 = vmatpush1.bf16.msra.mxu0 %v1146_v19 }
  0x5a   :  { %844 = vmatprep.subr.bf16.mxu0 %v1151_v20 }
  0x5d   :  { %845 = vmatpush1.bf16.msra.mxu0 %v1149_v21 }
  0x5e   :  { %846 = vmatprep.subr.bf16.mxu0 %v1154_v22 }
  0x61   :  { %847 = vmatpush1.bf16.msra.mxu0 %v1152_v23 }
  0x62   :  { %848 = vmatprep.subr.bf16.mxu0 %v1157_v24 }
  0x65   :  { %849 = vmatpush1.bf16.msra.mxu0 %v1155_v25 }
  0x66   :  { %850 = vmatprep.subr.bf16.mxu0 %v1160_v26 }
  0x69   :  { %851 = vmatpush1.bf16.msra.mxu0 %v1158_v27 }
  0x6a   :  { %852 = vmatprep.subr.bf16.mxu0 %v1163_v28 }
  0x6d   :  { %853 = vmatpush1.bf16.msra.mxu0 %v1161_v29 }
  0x6e   :  { %854 = vmatprep.subr.bf16.mxu0 %v1166_v30 }
  0x71   :  { %855 = vmatpush1.bf16.msra.mxu0 %v1164_v31 }
 0x107   :  { %v1003_v33 = vpop.f32.mrb[0].mxu0 }
 0x108   :  { %v1025_v34 = vpop.f32.mrb[0].mxu1  ;;  %v1004_v36 = vpop.f32.mrb[1].mxu0 }
 0x109   :  { %v1026_v37 = vpop.f32.mrb[1].mxu1  ;;  %v1005_v38 = vadd.f32 %v1004_v36, %v1003_v33  ;;  %v1006_v40 = vpop.f32.mrb[2].mxu0 }
 0x10a   :  { %v1027_v39 = vadd.f32 %v1026_v37, %v1025_v34  ;;  %v1028_v41 = vpop.f32.mrb[2].mxu1  ;;  %v1007_v42 = vpop.f32.mrb[3].mxu0 }
 0x10b   :  { %v1029_v43 = vpop.f32.mrb[3].mxu1  ;;  %v605_v44 = vadd.f32 %v1005_v38, %v906_v35 }
 0x10d   :  { %v645_v45 = vadd.f32 %v1027_v39, %v605_v44 }
 0x127   :  { %v1047_v46 = vpop.f32.mrb[4].mxu0 }
 0x128   :  { %v1069_v47 = vpop.f32.mrb[4].mxu1  ;;  %v1048_v48 = vpop.f32.mrb[5].mxu0 }
 0x129   :  { %v1049_v49 = vadd.f32 %v1048_v48, %v1047_v46  ;;  %v1070_v50 = vpop.f32.mrb[5].mxu1  ;;  %v1050_v51 = vpop.f32.mrb[6].mxu0 }
 0x12a   :  { %v1071_v52 = vadd.f32 %v1070_v50, %v1069_v47  ;;  %v1072_v53 = vpop.f32.mrb[6].mxu1  ;;  %v1051_v54 = vpop.f32.mrb[7].mxu0 }
 0x12b   :  { %v685_v55 = vadd.f32 %v1049_v49, %v645_v45  ;;  %v1073_v56 = vpop.f32.mrb[7].mxu1 }
 0x12d   :  { %v725_v57 = vadd.f32 %v1071_v52, %v685_v55 }
 0x12f   :  { %v730_v58 = vmax.f32 %v725_v57, 0.0 }
 0x131   :  { %v731_v59 = vpack.c.bf16 %v730_v58, %v730_v58 }
 0x133   :  { %873 = vmatmul.mubr.bf16.vlgmr.msra.gmra.mrb[8].mxu0 %v731_v59 }
 0x206   :  { %v874_v3 = vpop.f32.mrb[8].mxu0 }
 0x207   :  { %v875_v4 = vadd.f32 %v874_v3, %v753_v1  ;;  %v876_v5 = vpop.f32.mrb[9].mxu0 }
 0x208   :  { %v877_v6 = vadd.f32 %v876_v5, %v757_v2  ;;  %v878_v7 = vpop.f32.mrb[10].mxu0 }
 0x209   :  { %881 = vst [vmem:[%s1330_s5] sm:$0xff] %v875_v4  ;;  %v879_v8 = vpop.f32.mrb[11].mxu0 }
 0x20a   :  { %v885_v9 = vand.u32 2147483647, %v877_v6  ;;  %v882_v20 = vmax.f32 %v877_v6, 0.0  ;;  %vm883_vm1 = vcmp.ne.f32.partialorder %v877_v6, %v877_v6 }
 0x20c   :  { %v886_v10 = vsub.f32 0.0, %v885_v9 }
 0x20e   :  { %v887_v11 = vmul.f32 1.442695, %v886_v10 }
 0x210   :  { %1167 = vpow2.f32 %v887_v11 }
 0x21a   :  { %v1168_v12 = vpop.eup %1167 }
 0x21b   :  { %v889_v13 = vadd.f32 1.0, %v1168_v12  ;;  %v892_v14 = vmul.f32 -0.5, %v1168_v12  ;;  %v895_v16 = vand.u32 2147483647, %v1168_v12 }
 0x21d   :  { %1169 = vlog2.f32 %v889_v13  ;;  %v893_v15 = vadd.f32 1.0, %v892_v14  ;;  %vm896_vm0 = vcmp.lt.f32.partialorder %v895_v16, 0.0004427343 }
 0x21f   :  { %v894_v19 = vmul.f32 %v1168_v12, %v893_v15 }
 0x227   :  { %v1170_v17 = vpop.eup %1169 }
 0x228   :  { %v891_v18 = vmul.f32 0.6931472, %v1170_v17 }
 0x22a   :  { %v897_v21 = vsel %vm896_vm0, %v894_v19, %v891_v18 }
 0x22b   :  { %v898_v22 = vadd.f32 %v897_v21, %v882_v20 }
 0x22d   :  { %v899_v23 = vsel %vm883_vm1, %v877_v6, %v898_v22 }
 0x22e   :  { %900 = vst [vmem:[%s1330_s5 + $0x8] sm:$0xff] %v899_v23 }
 0x22f   :  { %905 = vsyncpa [#allocation3], 1 }

</bundles_post_ra>
